<compile_context>
chip_gen: v7x
topology: tpu7x:2x2x1
jax: 0.10.0
libtpu: 0.0.40
codegen_flags: <defaults>
</compile_context>

<pallas_src>
import jax
import jax.numpy as jnp
from jax.experimental import pallas as pl
from jax.experimental.pallas import tpu as pltpu

N_LAYERS = 3
BN_EPS = 1e-5


def _elu(v):
    # ELU(alpha=1): v if v > 0 else exp(v) - 1.
    # exp goes to the otherwise-idle EUP slot; kept as exp-1 (rather than expm1)
    # for guaranteed Mosaic lowering — the delta is a single VPU subtract.
    return jnp.where(v > 0, v, jnp.exp(jnp.minimum(v, 0.0)) - 1.0)


def fcres_kernel(x_ref, w_ref, g_ref, beta_ref, o_ref, e_ref):
    """One grid step == one (Linear -> BN -> ELU) layer; activations carried in VMEM scratch."""
    i = pl.program_id(0)
    last = pl.num_programs(0) - 1

    @pl.when(i == 0)
    def _init():
        e_ref[...] = x_ref[...].astype(jnp.float32)

    # Linear (bias dropped: cancels exactly under training-mode BatchNorm).
    # bf16 operands into the MXU, f32 accumulation.
    y = jnp.dot(e_ref[...].astype(jnp.bfloat16), w_ref[...],
                preferred_element_type=jnp.float32)              # (B, D) f32

    # BatchNorm1d, training mode (batch mean, biased variance).
    # Two independent sublane reductions (overlap on the XLUs), affine folded.
    inv_b = jnp.float32(1.0 / y.shape[0])
    s1 = jnp.sum(y, axis=0, keepdims=True)                       # (1, D)
    s2 = jnp.sum(y * y, axis=0, keepdims=True)                   # (1, D)
    mean = s1 * inv_b
    var = jnp.maximum(s2 * inv_b - mean * mean, 0.0)
    scale = g_ref[...].astype(jnp.float32) * jax.lax.rsqrt(var + BN_EPS)   # (1, D)
    shift = beta_ref[...].astype(jnp.float32) - mean * scale               # (1, D)
    y = y * scale + shift                                        # single FMA-able pass

    @pl.when(i < last)
    def _mid():
        e_ref[...] = _elu(y)

    @pl.when(i == last)
    def _final():
        # residual add + final nonlinearity; x is still VMEM-resident
        o_ref[...] = _elu(y + x_ref[...].astype(jnp.float32)).astype(o_ref.dtype)


def fc_res_block(x, weights_bf16, gammas, betas):
    """x: (B, D) f32; weights_bf16: (n, D, D) bf16 (pre-transposed, y = e @ W[i]);
    gammas/betas: (n, 1, D) f32."""
    B, D = x.shape
    n = weights_bf16.shape[0]
    wbytes = weights_bf16.dtype.itemsize

    # VMEM budget: double-buffered per-layer weights + resident x/e/out + gamma/beta,
    # with headroom; clamped so the plan also fits v7x's 64 MiB physical VMEM.
    working = (2 * D * D * wbytes          # 2 weight buffers (pipeline double-buffer)
               + 3 * B * D * 4             # x + e scratch + out (f32)
               + 2 * 2 * D * 4)            # gamma/beta (double-buffered)
    vmem_limit = int(min(max(2 * working + (4 << 20), 16 << 20), 64 << 20))

    cost = pl.CostEstimate(
        flops=int(2 * n * B * D * D),
        transcendentals=int(n * B * D),
        bytes_accessed=int(weights_bf16.size * wbytes
                           + gammas.size * 4 + betas.size * 4
                           + 2 * B * D * 4),
    )

    return pl.pallas_call(
        fcres_kernel,
        out_shape=jax.ShapeDtypeStruct((B, D), x.dtype),
        grid_spec=pltpu.PrefetchScalarGridSpec(
            num_scalar_prefetch=0,
            grid=(n,),
            in_specs=[
                pl.BlockSpec((B, D), lambda i: (0, 0)),             # x: resident across layers
                pl.BlockSpec((None, D, D), lambda i: (i, 0, 0)),    # layer-i weights (streamed)
                pl.BlockSpec((None, 1, D), lambda i: (i, 0, 0)),    # layer-i gamma
                pl.BlockSpec((None, 1, D), lambda i: (i, 0, 0)),    # layer-i beta
            ],
            out_specs=pl.BlockSpec((B, D), lambda i: (0, 0)),
            scratch_shapes=[pltpu.VMEM((B, D), jnp.float32)],       # carried activation e
        ),
        compiler_params=pltpu.CompilerParams(
            dimension_semantics=("arbitrary",),                     # layer axis carries state
            vmem_limit_bytes=vmem_limit,
        ),
        input_output_aliases={0: 0},                                # out reuses x's HBM buffer
        cost_estimate=cost,
    )(x, weights_bf16, gammas, betas)


def reference(x, weights, biases, gammas, betas, matmul_dtype=jnp.float32):
    """Pure-JAX reference matching the PyTorch module (bias kept; it cancels under BN)."""
    e = x.astype(jnp.float32)
    x32 = e
    n = weights.shape[0]
    for i in range(n):
        a = e.astype(matmul_dtype)
        w = weights[i].astype(matmul_dtype)
        e = jnp.dot(a, w, preferred_element_type=jnp.float32) + biases[i]
        mean = jnp.mean(e, axis=0, keepdims=True)
        var = jnp.mean((e - mean) ** 2, axis=0, keepdims=True)     # biased, training-mode BN
        e = (e - mean) * jax.lax.rsqrt(var + BN_EPS)
        e = e * gammas[i] + betas[i]
        if i < n - 1:
            e = _elu(e)
    return _elu(e + x32).astype(x.dtype)


if __name__ == "__main__":
    B, D = 8, 32
    key = jax.random.PRNGKey(0)
    kx, kw, kb, kg, kbt = jax.random.split(key, 5)

    x = jax.random.normal(kx, (B, D), dtype=jnp.float32)

    bound = 1.0 / jnp.sqrt(jnp.float32(D))
    weights = jax.random.uniform(kw, (N_LAYERS, D, D), jnp.float32, -bound, bound)
    biases = jax.random.uniform(kb, (N_LAYERS, 1, D), jnp.float32, -bound, bound)
    gammas = 1.0 + 0.01 * jax.random.normal(kg, (N_LAYERS, 1, D), jnp.float32)
    betas = 0.01 * jax.random.normal(kbt, (N_LAYERS, 1, D), jnp.float32)

    # Compute references BEFORE the kernel: the kernel aliases x's buffer with
    # its output, so x may be overwritten in place afterwards.
    ref_matched = reference(x, weights, biases, gammas, betas, matmul_dtype=jnp.bfloat16)
    ref_f32 = reference(x, weights, biases, gammas, betas, matmul_dtype=jnp.float32)
    ref_matched, ref_f32 = jax.block_until_ready((ref_matched, ref_f32))

    out = fc_res_block(x, weights.astype(jnp.bfloat16), gammas, betas)
    out = jax.block_until_ready(out)

    assert out.shape == (B, D) and out.dtype == jnp.float32
    # Kernel logic vs a reference using the same MXU dtype strategy (bf16 in, f32 acc).
    assert jnp.allclose(out, ref_matched, atol=2e-3, rtol=2e-3), "mismatch vs bf16-matched reference"
    # Full-f32 PyTorch-style semantics, within bf16 quantization noise.
    assert jnp.allclose(out, ref_f32, atol=6e-2, rtol=6e-2), "mismatch vs f32 reference"

    print("KERNEL_OK")
</pallas_src>

<mosaic_0001>
module attributes {stable_mosaic.version = 11 : i64} {
  func.func @fcres_kernel(%arg0: i32, %arg1: memref<8x32xf32, #tpu.memory_space<vmem>>, %arg2: memref<1x32x32xbf16, #tpu.memory_space<vmem>>, %arg3: memref<1x1x32xf32, #tpu.memory_space<vmem>>, %arg4: memref<1x1x32xf32, #tpu.memory_space<vmem>>, %arg5: memref<8x32xf32, #tpu.memory_space<vmem>>, %arg6: memref<8x32xf32, #tpu.memory_space<vmem>>) attributes {dimension_semantics = [#tpu.dimension_semantics<arbitrary>], iteration_bounds = array<i64: 3>, scalar_prefetch = 0 : i64, scratch_operands = 1 : i64, tpu.core_type = #tpu.core_type<tc>, window_params = [{pipeline_mode = #tpu.pipeline_mode<synchronous>, transform_indices = @transform_0, window_bounds = array<i64: 8, 32>}, {transform_indices = @transform_1, window_bounds = array<i64: 1, 32, 32>}, {transform_indices = @transform_2, window_bounds = array<i64: 1, 1, 32>}, {transform_indices = @transform_3, window_bounds = array<i64: 1, 1, 32>}, {pipeline_mode = #tpu.pipeline_mode<synchronous>, transform_indices = @transform_4, window_bounds = array<i64: 8, 32>}]} {
    %c0_i32 = arith.constant 0 : i32
    %0 = arith.cmpi eq, %arg0, %c0_i32 : i32
    %1 = arith.extui %0 : i1 to i32
    %c0_i32_0 = arith.constant 0 : i32
    %2 = arith.cmpi ne, %1, %c0_i32_0 : i32
    scf.if %2 {
      %c0_20 = arith.constant 0 : index
      %c0_21 = arith.constant 0 : index
      %41 = vector.load %arg1[%c0_20, %c0_21] : memref<8x32xf32, #tpu.memory_space<vmem>>, vector<8x32xf32>
      %c0_22 = arith.constant 0 : index
      %c0_23 = arith.constant 0 : index
      %42 = vector.load %arg6[%c0_22, %c0_23] : memref<8x32xf32, #tpu.memory_space<vmem>>, vector<8x32xf32>
      tpu.vector_store %arg6[%c0_22, %c0_23], %41 {strides = array<i32>} : memref<8x32xf32, #tpu.memory_space<vmem>>, vector<8x32xf32>,
    } else {
    }
    %c0 = arith.constant 0 : index
    %c0_1 = arith.constant 0 : index
    %3 = vector.load %arg6[%c0, %c0_1] : memref<8x32xf32, #tpu.memory_space<vmem>>, vector<8x32xf32>
    %4 = arith.truncf %3 : vector<8x32xf32> to vector<8x32xbf16>
    %c0_2 = arith.constant 0 : index
    %c0_3 = arith.constant 0 : index
    %c0_4 = arith.constant 0 : index
    %5 = vector.load %arg2[%c0_2, %c0_3, %c0_4] : memref<1x32x32xbf16, #tpu.memory_space<vmem>>, vector<1x32x32xbf16>
    %6 = vector.shape_cast %5 : vector<1x32x32xbf16> to vector<32x32xbf16>
    %cst = arith.constant dense<0.000000e+00> : vector<8x32xf32>
    %7 = tpu.matmul %4, %6, %cst {dimension_numbers = #tpu.dot_dimension_numbers<[1], [0], [0], [1], [0, 0, 1, 1], [], []>} : vector<8x32xbf16>, vector<32x32xbf16>, vector<8x32xf32> -> vector<8x32xf32>
    %cst_5 = arith.constant dense<0.000000e+00> : vector<32xf32>
    %8 = vector.multi_reduction <add>, %7, %cst_5 [0] : vector<8x32xf32> to vector<32xf32>
    %9 = vector.shape_cast %8 : vector<32xf32> to vector<1x32xf32>
    %10 = arith.mulf %7, %7 : vector<8x32xf32>
    %cst_6 = arith.constant dense<0.000000e+00> : vector<32xf32>
    %11 = vector.multi_reduction <add>, %10, %cst_6 [0] : vector<8x32xf32> to vector<32xf32>
    %12 = vector.shape_cast %11 : vector<32xf32> to vector<1x32xf32>
    %cst_7 = arith.constant 1.250000e-01 : f32
    %13 = vector.broadcast %cst_7 : f32 to vector<1x32xf32>
    %14 = arith.mulf %9, %13 : vector<1x32xf32>
    %cst_8 = arith.constant 1.250000e-01 : f32
    %15 = vector.broadcast %cst_8 : f32 to vector<1x32xf32>
    %16 = arith.mulf %12, %15 : vector<1x32xf32>
    %17 = arith.mulf %14, %14 : vector<1x32xf32>
    %18 = arith.subf %16, %17 : vector<1x32xf32>
    %cst_9 = arith.constant 0.000000e+00 : f32
    %19 = vector.broadcast %cst_9 : f32 to vector<1x32xf32>
    %20 = arith.maximumf %18, %19 : vector<1x32xf32>
    %c0_10 = arith.constant 0 : index
    %c0_11 = arith.constant 0 : index
    %c0_12 = arith.constant 0 : index
    %21 = vector.load %arg3[%c0_10, %c0_11, %c0_12] : memref<1x1x32xf32, #tpu.memory_space<vmem>>, vector<1x1x32xf32>
    %22 = vector.shape_cast %21 : vector<1x1x32xf32> to vector<1x32xf32>
    %cst_13 = arith.constant 9.99999974E-6 : f32
    %23 = vector.broadcast %cst_13 : f32 to vector<1x32xf32>
    %24 = arith.addf %20, %23 : vector<1x32xf32>
    %25 = math.rsqrt %24 : vector<1x32xf32>
    %26 = arith.mulf %22, %25 : vector<1x32xf32>
    %c0_14 = arith.constant 0 : index
    %c0_15 = arith.constant 0 : index
    %c0_16 = arith.constant 0 : index
    %27 = vector.load %arg4[%c0_14, %c0_15, %c0_16] : memref<1x1x32xf32, #tpu.memory_space<vmem>>, vector<1x1x32xf32>
    %28 = vector.shape_cast %27 : vector<1x1x32xf32> to vector<1x32xf32>
    %29 = arith.mulf %14, %26 : vector<1x32xf32>
    %30 = arith.subf %28, %29 : vector<1x32xf32>
    %31 = vector.broadcast %26 : vector<1x32xf32> to vector<8x32xf32>
    %32 = arith.mulf %7, %31 : vector<8x32xf32>
    %33 = vector.broadcast %30 : vector<1x32xf32> to vector<8x32xf32>
    %34 = arith.addf %32, %33 : vector<8x32xf32>
    %c2_i32 = arith.constant 2 : i32
    %35 = arith.cmpi slt, %arg0, %c2_i32 : i32
    %36 = arith.extui %35 : i1 to i32
    %c0_i32_17 = arith.constant 0 : i32
    %37 = arith.cmpi ne, %36, %c0_i32_17 : i32
    scf.if %37 {
      %cst_20 = arith.constant 0.000000e+00 : f32
      %41 = vector.broadcast %cst_20 : f32 to vector<8x32xf32>
      %42 = arith.cmpf ogt, %34, %41 : vector<8x32xf32>
      %cst_21 = arith.constant 0.000000e+00 : f32
      %43 = vector.broadcast %cst_21 : f32 to vector<8x32xf32>
      %44 = arith.minimumf %34, %43 : vector<8x32xf32>
      %45 = math.exp %44 : vector<8x32xf32>
      %cst_22 = arith.constant 1.000000e+00 : f32
      %46 = vector.broadcast %cst_22 : f32 to vector<8x32xf32>
      %47 = arith.subf %45, %46 : vector<8x32xf32>
      %48 = arith.select %42, %34, %47 : vector<8x32xi1>, vector<8x32xf32>
      %c0_23 = arith.constant 0 : index
      %c0_24 = arith.constant 0 : index
      %49 = vector.load %arg6[%c0_23, %c0_24] : memref<8x32xf32, #tpu.memory_space<vmem>>, vector<8x32xf32>
      tpu.vector_store %arg6[%c0_23, %c0_24], %48 {strides = array<i32>} : memref<8x32xf32, #tpu.memory_space<vmem>>, vector<8x32xf32>,
    } else {
    }
    %c2_i32_18 = arith.constant 2 : i32
    %38 = arith.cmpi eq, %arg0, %c2_i32_18 : i32
    %39 = arith.extui %38 : i1 to i32
    %c0_i32_19 = arith.constant 0 : i32
    %40 = arith.cmpi ne, %39, %c0_i32_19 : i32
    scf.if %40 {
      %c0_20 = arith.constant 0 : index
      %c0_21 = arith.constant 0 : index
      %41 = vector.load %arg1[%c0_20, %c0_21] : memref<8x32xf32, #tpu.memory_space<vmem>>, vector<8x32xf32>
      %42 = arith.addf %34, %41 : vector<8x32xf32>
      %cst_22 = arith.constant 0.000000e+00 : f32
      %43 = vector.broadcast %cst_22 : f32 to vector<8x32xf32>
      %44 = arith.cmpf ogt, %42, %43 : vector<8x32xf32>
      %cst_23 = arith.constant 0.000000e+00 : f32
      %45 = vector.broadcast %cst_23 : f32 to vector<8x32xf32>
      %46 = arith.minimumf %42, %45 : vector<8x32xf32>
      %47 = math.exp %46 : vector<8x32xf32>
      %cst_24 = arith.constant 1.000000e+00 : f32
      %48 = vector.broadcast %cst_24 : f32 to vector<8x32xf32>
      %49 = arith.subf %47, %48 : vector<8x32xf32>
      %50 = arith.select %44, %42, %49 : vector<8x32xi1>, vector<8x32xf32>
      %c0_25 = arith.constant 0 : index
      %c0_26 = arith.constant 0 : index
      %51 = vector.load %arg5[%c0_25, %c0_26] : memref<8x32xf32, #tpu.memory_space<vmem>>, vector<8x32xf32>
      tpu.vector_store %arg5[%c0_25, %c0_26], %50 {strides = array<i32>} : memref<8x32xf32, #tpu.memory_space<vmem>>, vector<8x32xf32>,
    } else {
    }
    return
  }
  func.func @transform_0(%arg0: i32) -> (i32, i32) {
    %c0_i32 = arith.constant 0 : i32
    %c0_i32_0 = arith.constant 0 : i32
    %c0_i32_1 = arith.constant 0 : i32
    return %c0_i32, %c0_i32_0 : i32, i32
  }
  func.func @transform_1(%arg0: i32) -> (i32, i32, i32) {
    %c0_i32 = arith.constant 0 : i32
    %c0_i32_0 = arith.constant 0 : i32
    %c0_i32_1 = arith.constant 0 : i32
    return %arg0, %c0_i32, %c0_i32_0 : i32, i32, i32
  }
  func.func @transform_2(%arg0: i32) -> (i32, i32, i32) {
    %c0_i32 = arith.constant 0 : i32
    %c0_i32_0 = arith.constant 0 : i32
    %c0_i32_1 = arith.constant 0 : i32
    return %arg0, %c0_i32, %c0_i32_0 : i32, i32, i32
  }
  func.func @transform_3(%arg0: i32) -> (i32, i32, i32) {
    %c0_i32 = arith.constant 0 : i32
    %c0_i32_0 = arith.constant 0 : i32
    %c0_i32_1 = arith.constant 0 : i32
    return %arg0, %c0_i32, %c0_i32_0 : i32, i32, i32
  }
  func.func @transform_4(%arg0: i32) -> (i32, i32) {
    %c0_i32 = arith.constant 0 : i32
    %c0_i32_0 = arith.constant 0 : i32
    %c0_i32_1 = arith.constant 0 : i32
    return %c0_i32, %c0_i32_0 : i32, i32
  }
}

</mosaic_0001>

<bundles_post_ra>
// kernel: tpu_custom_call.1
= control target key start
LH: loop header
LB: loop body
LE: loop exit
PB: predicated region body
PF: predicated region fallthrough
CT: control target
= control target key end

     0   :  { %9 = vsyncpa [#allocation4], 0  ;;  %s928_s0 = inlined_call_operand.hbm [shape: f32[8,32], index: 0, kind: input, shape index: {}, may-alias: {0,4}]   ;;  %s929_s1 = inlined_call_operand.hbm [shape: bf16[3,32,32], index: 1, kind: input, shape index: {}]   ;;  %s930_s2 = inlined_call_operand.vmem [shape: f32[3,1,32], index: 2, kind: input, shape index: {}]   ;;  %s931_s3 = inlined_call_operand.vmem [shape: f32[3,1,32], index: 3, kind: input, shape index: {}]   ;;  %s932_s4 = inlined_call_operand.hbm [shape: f32[8,32], index: 4, kind: output, shape index: {}, may-alias: {0,4}]  }
   0x1   :  { %10 = vsyncpa [#allocation7], 0 }
   0x2   :  { %12 = vsyncpa [#allocation7 + $0x1], 0 }
   0x3   :  { %13 = vsyncpa [#allocation5], 0  ;;  %s730_s15 = smov 0   ;;  %s732_s16 = smov 0  }
   0x4   :  { %s734_s17 = smov 0   ;;  %s736_s18 = smov 0  }
   0x5 LB: > { %s749_s19 = sadd.s32 4294967295, %s696_s18   ;;  %s752_s20 = sadd.s32 1, %s696_s18   ;;  %s696_s18 = sphi %s736_s18, %s951_s18   ;;  %s692_s17 = sphi %s734_s17, %s950_s17   ;;  %s688_s16 = sphi %s732_s16, %s949_s16   ;;  %s684_s15 = sphi %s730_s15, %s948_s15  }
   0x6   : > { %s44_s21 = ssub.s32 %s696_s18, %s752_s20  ;;  %s47_s22 = sadd.s32 1, %s692_s17 }
   0x7   : > { %p45_p0 = scmp.eq.s32.totalorder %s44_s21, 0  ;;  %p54_p1 = scmp.ne.s32.totalorder %s692_s17, %s688_s16 }
   0x8   : > { %p55_p2 = scmp.eq.s32.totalorder %s696_s18, 0  ;;  %p60_p3 = scmp.ne.s32.totalorder %s688_s16, %s684_s15 }
   0x9   : > { %s762_s23 = scalar_select %p45_p0, %s692_s17, %s47_s22  }
   0xa   : > { %p764_p4 = por %p55_p2, %p54_p1  ;;  %p933_p5 = scmp.eq.s32.totalorder %s749_s19, 0 }
   0xb   : > { %p468_p6 = scmp.ge.s32.totalorder %s696_s18, 1  ;;  %p144_p7 = scmp.lt.s32.totalorder %s696_s18, 4 }
   0xc   : > { %p773_p8 = por %p933_p5, %p60_p3  ;;  %s698_s27 = smov [#allocation3]  }
   0xd   : > { %p778_p10 = pnand %p468_p6, %p144_p7  ;;  %s157_s28 = sshll.u32 %s698_s27, 4  ;;  %s158_s28 = int_to_ptr.vmem [resolvable:$true] %s157_s28 }
   0xe   : > { %s938_s25 = scalar_select %p773_p8, 1, 0 }
   0xf   : > { %s939_s26 = scalar_select %p778_p10, 1, 0 }
  0x10   : > { %p511_p11 = pneg %p778_p10  ;;  %p520_p12 = scmp.lt.s32.totalorder %s696_s18, 3 }
  0x11   : > { %s168_s29 = sand.u32 1, %s692_s17   ;;  %s570_s9 = scalar_lea.hbm %s928_s0, 128 }
  0x12   : > { %p788_p13 = pnand %p511_p11, %p933_p5  ;;  %p794_p0 = pnand %p520_p12, %p764_p4 }
  0x13   : > { %s471_s6 = sshll.u32 %s168_s29, 4  ;;  %p571_p1 = scmp.ne.s32.totalorder %s928_s0, %s570_s9 }
  0x14   : > { %s941_s5 = scalar_select %p794_p0, 1, 0 }
  0x15   : > { %p572_p2 = pneg %p788_p13  ;;  %p577_p4 = scmp.lt.u32.totalorder %s570_s9, %s928_s0 }
  0x17   : > { %p573_p3 = pnand %p572_p2, %p571_p1 }
  0x19   : > { %p574_p6 = pneg %p573_p3 }
  0x1b   : > { %p579_p7 = pnand %p577_p4, %p574_p6 }
  0x1d   : > { %582 = shalt.err (!%p579_p7)
}
  0x1e   : > { %s583_s14 = scalar_lea.vmem %s158_s28, 128  ;;  %p591_p5 = scmp.lt.s32.totalorder %s158_s28, %s158_s28 }
  0x1f   : > { %p584_p11 = scmp.ne.s32.totalorder %s158_s28, %s583_s14  ;;  %p592_p8 = scmp.lt.s32.totalorder %s583_s14, %s583_s14 }
  0x21   : > { %p586_p12 = pnand %p584_p11, %p572_p2  ;;  %p593_p10 = por %p592_p8, %p591_p5 }
  0x23   : > { %p587_p9 = pneg %p586_p12 }
  0x25   : > { %p594_p0 = pnand %p593_p10, %p587_p9 }
  0x27   : > { %597 = shalt.err (!%p594_p0)
}
  0x28   : > { %514 = dma.hbm_to_vmem [thread:$0]  (!%p788_p13), %s928_s0, 128, %s158_s28, [#allocation4]  }
  0x29   : > { %s489_s22 = sshll.u32 %s696_s18, 8  ;;  %s172_s8 = scalar_lea.vmem [#allocation6], %s471_s6 }
  0x2a   : > { %s818_s7 = scalar_lea.hbm %s929_s1, %s489_s22  ;;  %s179_s9 = sshll.u32 %s172_s8, 4  ;;  %s820_s9 = int_to_ptr.vmem [resolvable:$true] %s179_s9 }
  0x2b   : > { %s822_s30 = scalar_lea.sflag [#allocation7], %s168_s29  ;;  %s598_s10 = scalar_lea.hbm %s818_s7, 256 }
  0x2c   : > { %p599_p5 = scmp.ne.s32.totalorder %s818_s7, %s598_s10  ;;  %p942_p8 = scmp.ne.s32.totalorder %s941_s5, 0 }
  0x2d   : > { %s603_s11 = scalar_lea.hbm %s929_s1, 768  ;;  %p604_p0 = scmp.lt.u32.totalorder %s818_s7, %s929_s1 }
  0x2e   : > { %p600_p9 = pneg %p942_p8  ;;  %p605_p1 = scmp.lt.u32.totalorder %s603_s11, %s598_s10 }
  0x2f   : > { %p607_p3 = scmp.lt.u32.totalorder %s598_s10, %s818_s7 }
  0x30   : > { %p601_p10 = pnand %p600_p9, %p599_p5  ;;  %p606_p2 = por %p605_p1, %p604_p0 }
  0x32   : > { %p602_p13 = pneg %p601_p10  ;;  %p608_p6 = por %p607_p3, %p606_p2 }
  0x34   : > { %p609_p4 = pnand %p608_p6, %p602_p13 }
  0x36   : > { %612 = shalt.err (!%p609_p4)
}
  0x37   : > { %s613_s29 = scalar_lea.vmem %s820_s9, 256  ;;  %s699_s6 = smov [#allocation6]  }
  0x38   : > { %p614_p7 = scmp.ne.s32.totalorder %s820_s9, %s613_s29  ;;  %s618_s14 = sshll.u32 %s699_s6, 4  ;;  %s619_s14 = int_to_ptr.vmem [resolvable:$false] %s618_s14 }
  0x39   : > { %s620_s15 = scalar_lea.vmem %s619_s14, 512  ;;  %p621_p5 = scmp.lt.s32.totalorder %s820_s9, %s619_s14 }
  0x3a   : > { %p616_p11 = pnand %p614_p7, %p600_p9  ;;  %p622_p10 = scmp.lt.s32.totalorder %s620_s15, %s613_s29 }
  0x3c   : > { %p617_p12 = pneg %p616_p11  ;;  %p623_p0 = por %p622_p10, %p621_p5 }
  0x3e   : > { %p624_p1 = pnand %p623_p0, %p617_p12 }
  0x40   : > { %627 = shalt.err (!%p624_p1)
}
  0x41   : > { %s700_s21 = smov 64   ;;  %s701_s22 = smov 4  }
  0x42   : > { %518 = dma.hbm_to_vmem [thread:$0]  (!%p942_p8), %s818_s7, 256, %s820_s9, %s822_s30, %s700_s21, %s700_s21, %s701_s22  }
  0x43   : > { %p943_p9 = scmp.ne.s32.totalorder %s939_s26, 0 }
  0x44   : > { %p944_p13 = scmp.eq.s32.totalorder (!%p943_p9), %s749_s19, 0 }
  0x45   : > { %203 = sbr.rel (%p943_p9) target bundleno = 423 (0x1a7), region = 36 }
  0x4c   : > { %671 = dma.done.wait (%p944_p13), [#allocation4], 128   ;;  %p945_p2 = pmov %p944_p13 }
  0x4d   : > { %s209_s24 = sand.u32 1, %s688_s16   ;;  %p946_p3 = scmp.ne.s32.totalorder %s938_s25, 0 }
  0x4e   : > { %673 = vsyncadd (%p945_p2), [#allocation4], 4294967168  ;;  %s476_s27 = sshll.u32 %s209_s24, 4  ;;  %s210_s8 = scalar_lea.sflag [#allocation7], %s209_s24 }
  0x4f   : > { %s213_s10 = scalar_lea.vmem [#allocation6], %s476_s27 }
  0x50   : > { %675 = dma.done.wait (%p946_p3), %s210_s8, 256  }
  0x51   : > { %677 = vsyncadd (%p946_p3), %s210_s8, 4294967040  ;;  %p239_p8 = scmp.lt.s32.totalorder %s749_s19, 2  ;;  %p947_p6 = scmp.ne.s32.totalorder %s749_s19, 0 }
  0x52   : > { %v250_v0 = vld [vmem:[#allocation3] sm:$0xff] (!%p947_p6)  ;;  %vm251_vm0 = vcmask (!%p947_p6), 261120  }
  0x53   : > { %s863_s26 = scalar_select %p239_p8, %s749_s19, 2 }
  0x54   : > { %249 = sbr.rel (%p947_p6) target bundleno = 91 (0x5b), region = 48  ;;  %252 = vst.msk [vmem:[#allocation2] sm:$0xff] (!%p947_p6), %vm251_vm0, %v250_v0 }
  0x55   : > { %s241_s9 = scalar_lea.vmem %s930_s2, %s863_s26  ;;  %s244_s28 = scalar_lea.vmem %s931_s3, %s863_s26 }
  0x5b PF: > { %v562_v1 = vld [vmem:[%s213_s10] sm:$0xff]   ;;  %v702_v2 = vmov 0.0   ;;  %v563_v3 = vld [vmem:[%s213_s10 + $0x8] sm:$0xff]   ;;  %vm703_vm1 = vmmov 0   ;;  %vm271_vm2 = vcmask 261120   ;;  %v343_v31 = vlaneseq  ;;  %p481_p4 = scmp.ge.s32.totalorder %s749_s19, 2 }
  0x5c   : > { %493 = vmatprep.subr.bf16.mxu0 %v702_v2  ;;  %497 = vmatprep.mubr.msk.bf16.mxu0 %vm703_vm1, %v702_v2  ;;  %v253_v4 = vld [vmem:[#allocation2] sm:$0xff] }
  0x5d   : > { %494 = vmatpush3.bf16.msra.mxu0 %v562_v1  ;;  %v254_v5 = vpack.c.bf16 %v253_v4, %v253_v4  ;;  %v344_v32 = vshrl.u32 %v343_v31, 7  ;;  %v335_v33 = vld [vmem:[%s241_s9] sm:$0x1] }
  0x5e   : > { %495 = vmatprep.subr.bf16.mxu0 %v702_v2  ;;  %v339_v37 = vld [vmem:[%s244_s28] sm:$0x1] }
  0x5f   : > { %v345_v34 = vsub.s32 0, %v344_v32 }
  0x61   : > { %496 = vmatpush3.bf16.msra.mxu0 %v563_v3 }
  0x64   : > { %498 = vmatmul.mubr.msk.bf16.vlgmr.msra.gmra.mrb[0].mxu0 %vm271_vm2, %v254_v5 }
 0x137   : > { %v309_v6 = vpop.f32.mrb[0].mxu0 }
 0x138   : > { %v315_v7 = vsel %vm271_vm2, %v309_v6, 0.0  ;;  %v322_v8 = vmul.f32 %v309_v6, %v309_v6  ;;  %v499_v9 = vpop.f32.mrb[1].mxu0 }
 0x139   : > { %v316_v10 = vrot.slane %v315_v7, 4  ;;  %v312_v11 = vpop.f32.mrb[2].mxu0 }
 0x13a   : > { %v323_v12 = vsel %vm271_vm2, %v322_v8, 0.0  ;;  %v500_v13 = vpop.f32.mrb[3].mxu0 }
 0x13b   : > { %v317_v14 = vadd.f32 %v316_v10, %v315_v7  ;;  %v324_v15 = vrot.slane %v323_v12, 4 }
 0x13d   : > { %v318_v16 = vrot.slane %v317_v14, 2  ;;  %v325_v17 = vadd.f32 %v324_v15, %v323_v12 }
 0x13f   : > { %v319_v18 = vadd.f32 %v318_v16, %v317_v14  ;;  %v326_v19 = vrot.slane %v325_v17, 2 }
 0x141   : > { %v320_v20 = vrot.slane %v319_v18, 1  ;;  %v327_v21 = vadd.f32 %v326_v19, %v325_v17 }
 0x143   : > { %v321_v22 = vadd.f32 %v320_v20, %v319_v18  ;;  %v328_v23 = vrot.slane %v327_v21, 1 }
 0x145   : > { %v329_v24 = vadd.f32 %v328_v23, %v327_v21  ;;  %v330_v25 = vmul.f32 0.125, %v321_v22 }
 0x147   : > { %v331_v26 = vmul.f32 0.125, %v329_v24  ;;  %v332_v27 = vmul.f32 %v330_v25, %v330_v25 }
 0x149   : > { %v333_v28 = vsub.f32 %v331_v26, %v332_v27 }
 0x14b   : > { %v334_v29 = vmax.f32 %v333_v28, 0.0 }
 0x14d   : > { %v336_v30 = vadd.f32 1e-05, %v334_v29 }
 0x14f   : > { %564 = vrsqrt.f32 %v336_v30 }
 0x159   : > { %v565_v35 = vpop.eup %564 }
 0x15a   : > { %v338_v36 = vmul.f32 %v565_v35, %v335_v33 }
 0x15c   : > { %v340_v38 = vmul.f32 %v338_v36, %v330_v25  ;;  %v346_v39 = vrot.slane %v338_v36, %v345_v34  ;;  %359 = sbr.rel (%p481_p4) target bundleno = 375 (0x177), region = 52 }
 0x15e   : > { %v341_v40 = vsub.f32 %v339_v37, %v340_v38  ;;  %v348_v41 = vmul.f32 %v346_v39, %v309_v6 }
 0x160   : > { %v353_v42 = vrot.slane %v341_v40, %v345_v34 }
 0x162   : > { %v355_v43 = vadd.f32 %v353_v42, %v348_v41 }
 0x164   : > { %v361_v44 = vmin.f32 %v355_v43, 0.0  ;;  %vm360_vm3 = vcmp.gt.f32.partialorder %v355_v43, 0.0 }
 0x166   : > { %v362_v45 = vmul.f32 1.442695, %v361_v44 }
 0x168   : > { %566 = vpow2.f32 %v362_v45 }
 0x172   : > { %v567_v46 = vpop.eup %566 }
 0x173   : > { %v482_v47 = vadd.f32 -1.0, %v567_v46 }
 0x175   : > { %v365_v48 = vsel %vm360_vm3, %v355_v43, %v482_v47 }
 0x176   : > { %366 = vst.msk [vmem:[#allocation2] sm:$0xff] %vm271_vm2, %v365_v48 }
 0x177 PF: > { %p483_p7 = scmp.ne.s32.totalorder %s749_s19, 2 }
 0x178   : > { %v371_v49 = vld [vmem:[#allocation3] sm:$0xff] (!%p483_p7) }
 0x179   : > { %370 = sbr.rel (%p483_p7) target bundleno = 398 (0x18e), region = 56  ;;  %v372_v50 = vadd.f32 (!%p483_p7), %v371_v49, %v355_v43 }
 0x17b   : > { %v374_v51 = vmin.f32 (!%p483_p7), %v372_v50, 0.0  ;;  %vm373_vm4 = vcmp.gt.f32.partialorder (!%p483_p7), %v372_v50, 0.0 }
 0x17d   : > { %v375_v52 = vmul.f32 (!%p483_p7), 1.442695, %v374_v51 }
 0x17f   : > { %568 = vpow2.f32 (!%p483_p7), %v375_v52 }
 0x189   : > { %v569_v53 = vpop.eup %568 }
 0x18a   : > { %v484_v54 = vadd.f32 -1.0, %v569_v53 }
 0x18c   : > { %v378_v55 = vsel %vm373_vm4, %v372_v50, %v484_v54 }
 0x18d   : > { %379 = vst.msk [vmem:[#allocation8] sm:$0xff] %vm271_vm2, %v378_v55 }
 0x18e PF: > { %p522_p11 = scmp.eq.s32.totalorder %s749_s19, 2  ;;  %s704_s29 = smov [#allocation8]  }
 0x18f   : > { %s387_s6 = sshll.u32 %s704_s29, 4  ;;  %s388_s6 = int_to_ptr.vmem [resolvable:$true] %s387_s6 }
 0x190   : > { %s628_s14 = scalar_lea.vmem %s388_s6, 128  ;;  %p635_p0 = scmp.lt.s32.totalorder %s388_s6, %s388_s6 }
 0x191   : > { %p629_p12 = scmp.ne.s32.totalorder %s388_s6, %s628_s14  ;;  %p636_p1 = scmp.lt.s32.totalorder %s628_s14, %s628_s14 }
 0x193   : > { %p630_p5 = pnand %p629_p12, %p522_p11  ;;  %p637_p9 = por %p636_p1, %p635_p0 }
 0x195   : > { %p631_p10 = pneg %p630_p5 }
 0x197   : > { %p638_p13 = pnand %p637_p9, %p631_p10 }
 0x199   : > { %641 = shalt.err (!%p638_p13)
}
 0x19a   : > { %s642_s22 = scalar_lea.hbm %s932_s4, 128 }
 0x19b   : > { %p643_p2 = scmp.ne.s32.totalorder %s932_s4, %s642_s22  ;;  %p648_p6 = scmp.lt.u32.totalorder %s642_s22, %s932_s4 }
 0x19d   : > { %p644_p3 = pnand %p643_p2, %p522_p11 }
 0x19f   : > { %p645_p8 = pneg %p644_p3 }
 0x1a1   : > { %p650_p4 = pnand %p648_p6, %p645_p8 }
 0x1a3   : > { %653 = shalt.err (!%p650_p4)
}
 0x1a4   : > { %508 = dma.vmem_to_hbm [thread:$0]  (%p522_p11), %s388_s6, 128, %s932_s4, [#allocation5]  }
 0x1a5   : > { %679 = dma.done.wait (%p522_p11), [#allocation5], 128  }
 0x1a6   : > { %681 = vsyncadd (%p522_p11), [#allocation5], 4294967168 }
 0x1a7 PF: > { %p16_p7 = scmp.ge.s32.totalorder %s752_s20, 5   ;;  %s948_s15 = smov %s688_s16 }
 0x1a8   : > { %s949_s16 = smov %s692_s17  ;;  %s950_s17 = smov %s762_s23 }
 0x1a9   : > { %s951_s18 = smov %s752_s20  ;;  %18 = sbr.rel (!%p16_p7) target bundleno = 5 (0x5), region = 96 }
 0x1b0   :  { %400 = vsyncpa [#allocation4], 1 }
 0x1b1   :  { %402 = vsyncpa [#allocation4 + $0x1], 1 }
 0x1b2   :  { %403 = vsyncpa [#allocation7], 1 }
 0x1b3   :  { %405 = vsyncpa [#allocation7 + $0x1], 1 }
 0x1b4   :  { %406 = vsyncpa [#allocation5], 1 }
 0x1b5   :  { %408 = vsyncpa [#allocation5 + $0x1], 1 }

</bundles_post_ra>
